<compile_context>
chip_gen: v6e
topology: v6e:2x2x1
jax: 0.10.0
libtpu: 0.0.40
codegen_flags: <defaults>
</compile_context>

<pallas_src>
import functools

import jax
import jax.numpy as jnp
from jax import lax
from jax.experimental import pallas as pl
from jax.experimental.pallas import tpu as pltpu

EPS = 1e-5
COUT = 32          # conv1 output channels (fixed by the module)


# ----------------------------- Pallas kernels ------------------------------

def features_kernel(patches_ref, cw_ref, cb_ref, g_ref, fb_ref, h_ref, acc_ref,
                    *, pb):
    """Fused conv1(+bn0+bn1 folded)+ReLU and fc(+bn2 folded)+ReLU.

    Grid axis 0 runs over blocks of `pb` spatial output positions; the (B, D)
    result is accumulated in a resident f32 VMEM scratch and written (bias+ReLU)
    at the last step.  No in-kernel reshapes; every matmul is a clean 2-D dot.
      patches_ref : (pb, B, 9)   f32   im2col taps for this position block
      cw_ref      : (9, Cout)    f32   folded conv weights
      cb_ref      : (1, Cout)    f32   folded conv bias
      g_ref       : (pb, Cout, D) bf16 folded+permuted fc weights for this block
      fb_ref      : (1, D)       f32   folded fc bias
      h_ref       : (B, D)       bf16  output features
    """
    @pl.when(pl.program_id(0) == 0)
    def _init():
        acc_ref[...] = jnp.zeros_like(acc_ref)

    cw = cw_ref[...]
    cb = cb_ref[...]
    for q in range(pb):                                    # static unroll
        z = jnp.dot(patches_ref[q], cw,
                    preferred_element_type=jnp.float32) + cb          # (B, Cout)
        feat = jnp.maximum(z, 0.0).astype(jnp.bfloat16)                # conv+ReLU
        acc_ref[...] += jnp.dot(feat, g_ref[q],
                                preferred_element_type=jnp.float32)    # fc partial

    @pl.when(pl.program_id(0) == pl.num_programs(0) - 1)
    def _finish():
        h_ref[...] = jnp.maximum(acc_ref[...] + fb_ref[...],
                                 0.0).astype(h_ref.dtype)


def head_kernel(h_ref, ewt_ref, bent_ref, out_ref):
    """One entity tile of: sigmoid(h @ emb_e.T + b).  bf16 inputs, f32 accumulate."""
    logits = jnp.dot(h_ref[...], ewt_ref[...],
                     preferred_element_type=jnp.float32)
    out_ref[...] = jax.nn.sigmoid(logits + bent_ref[...])


# ------------------------------ kernel wrappers -----------------------------

def run_features(patches, conv_w, conv_b, fc_g, fc_b, pos_block):
    """patches (P_pad, B, 9), fc_g (P_pad, Cout, D) -> h (B, D) bf16."""
    p_pad, batch, _ = patches.shape
    cout = conv_w.shape[1]
    d = fc_g.shape[2]
    assert p_pad % pos_block == 0
    grid = (p_pad // pos_block,)

    return pl.pallas_call(
        functools.partial(features_kernel, pb=pos_block),
        out_shape=jax.ShapeDtypeStruct((batch, d), jnp.bfloat16),
        grid=grid,
        in_specs=[
            pl.BlockSpec((pos_block, batch, 9), lambda i: (i, 0, 0)),
            pl.BlockSpec((9, cout), lambda i: (0, 0)),
            pl.BlockSpec((1, cout), lambda i: (0, 0)),
            pl.BlockSpec((pos_block, cout, d), lambda i: (i, 0, 0)),
            pl.BlockSpec((1, d), lambda i: (0, 0)),
        ],
        out_specs=pl.BlockSpec((batch, d), lambda i: (0, 0)),
        scratch_shapes=[pltpu.VMEM((batch, d), jnp.float32)],
        compiler_params=pltpu.CompilerParams(
            dimension_semantics=("arbitrary",)),      # reduction over positions
    )(patches, conv_w, conv_b, fc_g, fc_b)


def run_head(h, ewt, b_ent, tile_e):
    """h (B, D) bf16, ewt (D, E) bf16, b_ent (1, E) f32 -> sigmoid scores (B, E)."""
    batch, d = h.shape
    num_e = ewt.shape[1]
    n_tiles = pl.cdiv(num_e, tile_e)
    e_pad = n_tiles * tile_e
    if e_pad != num_e:                                   # pad entity dim to the tile
        ewt = jnp.pad(ewt, ((0, 0), (0, e_pad - num_e)))
        b_ent = jnp.pad(b_ent, ((0, 0), (0, e_pad - num_e)))

    # VMEM: double-buffered bf16 table tile + output tile + bias tile + resident h.
    vmem_need = (2 * (d * tile_e * ewt.dtype.itemsize
                      + batch * tile_e * 4
                      + tile_e * b_ent.dtype.itemsize)
                 + 2 * batch * d * h.dtype.itemsize + (1 << 20))
    vmem_limit = int(min(max(vmem_need, 16 * 2**20), 48 * 2**20))

    out = pl.pallas_call(
        head_kernel,
        out_shape=jax.ShapeDtypeStruct((batch, e_pad), jnp.float32),
        grid=(n_tiles,),
        in_specs=[
            pl.BlockSpec((batch, d), lambda i: (0, 0)),       # h resident across E
            pl.BlockSpec((d, tile_e), lambda i: (0, i)),      # streamed entity table
            pl.BlockSpec((1, tile_e), lambda i: (0, i)),      # bias tile
        ],
        out_specs=pl.BlockSpec((batch, tile_e), lambda i: (0, i)),   # lane-dense
        compiler_params=pltpu.CompilerParams(
            dimension_semantics=("parallel",),                # megacore-shardable
            vmem_limit_bytes=vmem_limit),
        cost_estimate=pl.CostEstimate(
            flops=2 * batch * d * e_pad,
            transcendentals=batch * e_pad,
            bytes_accessed=(d * e_pad * ewt.dtype.itemsize
                            + batch * e_pad * 4
                            + batch * d * h.dtype.itemsize
                            + e_pad * 4)),
    )(h, ewt, b_ent)
    return out[:, :num_e] if e_pad != num_e else out


# ------------------------------ ConvE forward -------------------------------

def conve_forward(prep, e1, rel, *, emb_dim1, emb_dim2, tile_e=256, pos_block=8):
    batch = e1.shape[0]
    d1, d2 = emb_dim1, emb_dim2

    # embedding lookup + stacking (glue); bn0 is folded into the conv weights,
    # inp_drop / feature_map_drop / hidden_drop are identity in eval mode.
    e1_emb = jnp.take(prep["emb_e"], e1, axis=0).reshape(batch, d1, d2)
    rel_emb = jnp.take(prep["emb_rel"], rel, axis=0).reshape(batch, d1, d2)
    x = jnp.concatenate([e1_emb, rel_emb], axis=1)            # (B, 2*d1, d2)

    h_dim, w_dim = 2 * d1, d2
    ho, wo = h_dim - 2, w_dim - 2
    p = ho * wo

    # 3x3 'valid' im2col on the tiny stacked input, taps in (dy, dx) row-major
    # order matching the (Cout, 1, 3, 3) weight flatten.  (P, B, 9) so the
    # position axis is the leading (untiled-constraint-free) dim.
    cols = [x[:, dy:dy + ho, dx:dx + wo] for dy in range(3) for dx in range(3)]
    patches = jnp.stack(cols, axis=-1).reshape(batch, p, 9).transpose(1, 0, 2)

    fc_g = prep["fc_G"]                                       # (P, Cout, D) bf16
    p_pad = pl.cdiv(p, pos_block) * pos_block
    if p_pad != p:        # zero fc rows for padded positions -> zero contribution
        patches = jnp.pad(patches, ((0, p_pad - p), (0, 0), (0, 0)))
        fc_g = jnp.pad(fc_g, ((0, p_pad - p), (0, 0), (0, 0)))

    h = run_features(patches, prep["conv_w"], prep["conv_b"],
                     fc_g, prep["fc_b"], pos_block)           # (B, D) bf16

    return run_head(h, prep["emb_e_t"], prep["b_ent"], tile_e)  # (B, num_entities)


# ------------------------------- param setup --------------------------------

def init_params(key, num_entities, num_relations, emb_dim, emb_dim1, cout=COUT):
    """Raw, torch-shaped parameters (eval-mode running stats for the BNs)."""
    d2 = emb_dim // emb_dim1
    ho, wo = 2 * emb_dim1 - 2, d2 - 2
    hidden = cout * ho * wo
    ks = jax.random.split(key, 10)
    f32 = jnp.float32

    def xavier(k, shape):
        fan_out, fan_in = shape
        std = (2.0 / (fan_in + fan_out)) ** 0.5
        return (std * jax.random.normal(k, shape)).astype(f32)

    def bn(k, n):
        kg, kb, km, kv = jax.random.split(k, 4)
        return dict(
            gamma=(1.0 + 0.1 * jax.random.normal(kg, (n,))).astype(f32),
            beta=(0.1 * jax.random.normal(kb, (n,))).astype(f32),
            mean=(0.05 * jax.random.normal(km, (n,))).astype(f32),
            var=(0.5 + jax.random.uniform(kv, (n,))).astype(f32))

    return dict(
        emb_e=xavier(ks[0], (num_entities, emb_dim)).at[0].set(0.0),   # padding_idx=0
        emb_rel=xavier(ks[1], (num_relations, emb_dim)).at[0].set(0.0),
        conv_w=(0.2 * jax.random.normal(ks[2], (cout, 1, 3, 3))).astype(f32),
        conv_b=(0.05 * jax.random.normal(ks[3], (cout,))).astype(f32),
        fc_w=xavier(ks[4], (emb_dim, hidden)),                         # torch Linear
        fc_b=(0.05 * jax.random.normal(ks[5], (emb_dim,))).astype(f32),
        bn0=bn(ks[6], 1), bn1=bn(ks[7], cout), bn2=bn(ks[8], emb_dim),
        b=jnp.zeros((num_entities,), f32),                             # registered 'b'
    )


def fold_params(params, emb_dim1, emb_dim2, cout=COUT):
    """Fold bn0/bn1 into conv, bn2 into fc; permute fc rows to (oy, ox, c) order;
    cast the streamed operands (fc weights, entity table) to bf16."""
    f32 = jnp.float32
    ho, wo = 2 * emb_dim1 - 2, emb_dim2 - 2
    p = ho * wo
    d = params["fc_w"].shape[0]
    bn0, bn1, bn2 = params["bn0"], params["bn1"], params["bn2"]

    # conv <- bn1
    s1 = bn1["gamma"] * lax.rsqrt(bn1["var"] + EPS)                    # (Cout,)
    w1 = params["conv_w"].reshape(cout, 9).T * s1[None, :]             # (9, Cout)
    b1 = (params["conv_b"] - bn1["mean"]) * s1 + bn1["beta"]           # (Cout,)
    # conv <- bn0 (scalar affine on the conv input; conv is linear)
    s0 = bn0["gamma"][0] * lax.rsqrt(bn0["var"][0] + EPS)
    c0 = bn0["beta"][0] - bn0["mean"][0] * s0
    conv_w = (s0 * w1).astype(f32)
    conv_b = (b1 + c0 * jnp.sum(w1, axis=0)).reshape(1, cout).astype(f32)

    # fc <- bn2, then permute hidden rows (c, oy, ox) -> (oy*wo+ox, c)
    s2 = bn2["gamma"] * lax.rsqrt(bn2["var"] + EPS)                    # (D,)
    fw = params["fc_w"].T * s2[None, :]                                # (hidden, D)
    fc_b = ((params["fc_b"] - bn2["mean"]) * s2
            + bn2["beta"]).reshape(1, d).astype(f32)
    fc_g = fw.reshape(cout, p, d).transpose(1, 0, 2).astype(jnp.bfloat16)

    return dict(
        emb_e=params["emb_e"], emb_rel=params["emb_rel"],
        emb_e_t=params["emb_e"].T.astype(jnp.bfloat16),                # (D, E) bf16
        conv_w=conv_w, conv_b=conv_b,
        fc_G=fc_g, fc_b=fc_b,
        b_ent=params["b"].reshape(1, -1).astype(f32),
    )


if __name__ == "__main__":
    # small, ConvE-consistent shapes (entity count large enough to exercise the
    # E-tiled head: 1024 entities / 256-wide tiles -> 4 pipelined grid steps).
    num_entities, num_relations = 1024, 16
    embedding_dim, emb_dim1 = 32, 4          # -> emb_dim2 = 8, stacked input (8, 8)
    batch = 2

    key = jax.random.PRNGKey(0)
    kp, ke, kr = jax.random.split(key, 3)
    emb_dim2 = embedding_dim // emb_dim1

    raw = init_params(kp, num_entities, num_relations, embedding_dim, emb_dim1)
    prep = fold_params(raw, emb_dim1, emb_dim2)

    e1 = jax.random.randint(ke, (batch,), 0, num_entities, dtype=jnp.int32)
    rel = jax.random.randint(kr, (batch,), 0, num_relations, dtype=jnp.int32)

    fwd = jax.jit(functools.partial(
        conve_forward, emb_dim1=emb_dim1, emb_dim2=emb_dim2,
        tile_e=256, pos_block=8))

    pred = fwd(prep, e1, rel)
    pred = jax.block_until_ready(pred)

    assert pred.shape == (batch, num_entities)
    assert bool(jnp.all(jnp.isfinite(pred)))
    assert bool(jnp.all((pred >= 0.0) & (pred <= 1.0)))
    print("KERNEL_OK")
</pallas_src>

<mosaic_0001>
module attributes {stable_mosaic.version = 11 : i64} {
  func.func @features_kernel(%arg0: i32, %arg1: memref<8x2x9xf32, #tpu.memory_space<vmem>>, %arg2: memref<9x32xf32, #tpu.memory_space<vmem>>, %arg3: memref<1x32xf32, #tpu.memory_space<vmem>>, %arg4: memref<8x32x32xbf16, #tpu.memory_space<vmem>>, %arg5: memref<1x32xf32, #tpu.memory_space<vmem>>, %arg6: memref<2x32xbf16, #tpu.memory_space<vmem>>, %arg7: memref<2x32xf32, #tpu.memory_space<vmem>>) attributes {dimension_semantics = [#tpu.dimension_semantics<arbitrary>], iteration_bounds = array<i64: 5>, scalar_prefetch = 0 : i64, scratch_operands = 1 : i64, tpu.core_type = #tpu.core_type<tc>, window_params = [{transform_indices = @transform_0, window_bounds = array<i64: 8, 2, 9>}, {pipeline_mode = #tpu.pipeline_mode<synchronous>, transform_indices = @transform_1, window_bounds = array<i64: 9, 32>}, {pipeline_mode = #tpu.pipeline_mode<synchronous>, transform_indices = @transform_2, window_bounds = array<i64: 1, 32>}, {transform_indices = @transform_3, window_bounds = array<i64: 8, 32, 32>}, {pipeline_mode = #tpu.pipeline_mode<synchronous>, transform_indices = @transform_4, window_bounds = array<i64: 1, 32>}, {pipeline_mode = #tpu.pipeline_mode<synchronous>, transform_indices = @transform_5, window_bounds = array<i64: 2, 32>}]} {
    %c0_i32 = arith.constant 0 : i32
    %0 = arith.cmpi eq, %arg0, %c0_i32 : i32
    %1 = arith.extui %0 : i1 to i32
    %c0_i32_0 = arith.constant 0 : i32
    %2 = arith.cmpi ne, %1, %c0_i32_0 : i32
    scf.if %2 {
      %cst_101 = arith.constant 0.000000e+00 : f32
      %120 = vector.broadcast %cst_101 : f32 to vector<2x32xf32>
      %c0_102 = arith.constant 0 : index
      %c0_103 = arith.constant 0 : index
      %121 = vector.load %arg7[%c0_102, %c0_103] : memref<2x32xf32, #tpu.memory_space<vmem>>, vector<2x32xf32>
      tpu.vector_store %arg7[%c0_102, %c0_103], %120 {strides = array<i32>} : memref<2x32xf32, #tpu.memory_space<vmem>>, vector<2x32xf32>,
    } else {
    }
    %c0 = arith.constant 0 : index
    %c0_1 = arith.constant 0 : index
    %3 = vector.load %arg2[%c0, %c0_1] : memref<9x32xf32, #tpu.memory_space<vmem>>, vector<9x32xf32>
    %c0_2 = arith.constant 0 : index
    %c0_3 = arith.constant 0 : index
    %4 = vector.load %arg3[%c0_2, %c0_3] : memref<1x32xf32, #tpu.memory_space<vmem>>, vector<1x32xf32>
    %c0_4 = arith.constant 0 : index
    %c0_5 = arith.constant 0 : index
    %c0_6 = arith.constant 0 : index
    %5 = vector.load %arg1[%c0_4, %c0_5, %c0_6] : memref<8x2x9xf32, #tpu.memory_space<vmem>>, vector<1x2x9xf32>
    %6 = vector.shape_cast %5 : vector<1x2x9xf32> to vector<2x9xf32>
    %cst = arith.constant dense<0.000000e+00> : vector<2x32xf32>
    %7 = tpu.matmul %6, %3, %cst {dimension_numbers = #tpu.dot_dimension_numbers<[1], [0], [0], [1], [0, 0, 1, 1], [], []>} : vector<2x9xf32>, vector<9x32xf32>, vector<2x32xf32> -> vector<2x32xf32>
    %8 = vector.broadcast %4 : vector<1x32xf32> to vector<2x32xf32>
    %9 = arith.addf %7, %8 : vector<2x32xf32>
    %cst_7 = arith.constant 0.000000e+00 : f32
    %10 = vector.broadcast %cst_7 : f32 to vector<2x32xf32>
    %11 = arith.maximumf %9, %10 : vector<2x32xf32>
    %12 = arith.truncf %11 : vector<2x32xf32> to vector<2x32xbf16>
    %c0_8 = arith.constant 0 : index
    %c0_9 = arith.constant 0 : index
    %13 = vector.load %arg7[%c0_8, %c0_9] : memref<2x32xf32, #tpu.memory_space<vmem>>, vector<2x32xf32>
    %c0_10 = arith.constant 0 : index
    %c0_11 = arith.constant 0 : index
    %c0_12 = arith.constant 0 : index
    %14 = vector.load %arg4[%c0_10, %c0_11, %c0_12] : memref<8x32x32xbf16, #tpu.memory_space<vmem>>, vector<1x32x32xbf16>
    %15 = vector.shape_cast %14 : vector<1x32x32xbf16> to vector<32x32xbf16>
    %cst_13 = arith.constant dense<0.000000e+00> : vector<2x32xf32>
    %16 = tpu.matmul %12, %15, %cst_13 {dimension_numbers = #tpu.dot_dimension_numbers<[1], [0], [0], [1], [0, 0, 1, 1], [], []>} : vector<2x32xbf16>, vector<32x32xbf16>, vector<2x32xf32> -> vector<2x32xf32>
    %17 = arith.addf %13, %16 : vector<2x32xf32>
    %c0_14 = arith.constant 0 : index
    %c0_15 = arith.constant 0 : index
    %18 = vector.load %arg7[%c0_14, %c0_15] : memref<2x32xf32, #tpu.memory_space<vmem>>, vector<2x32xf32>
    tpu.vector_store %arg7[%c0_14, %c0_15], %17 {strides = array<i32>} : memref<2x32xf32, #tpu.memory_space<vmem>>, vector<2x32xf32>,
    %c1 = arith.constant 1 : index
    %c0_16 = arith.constant 0 : index
    %c0_17 = arith.constant 0 : index
    %19 = vector.load %arg1[%c1, %c0_16, %c0_17] : memref<8x2x9xf32, #tpu.memory_space<vmem>>, vector<1x2x9xf32>
    %20 = vector.shape_cast %19 : vector<1x2x9xf32> to vector<2x9xf32>
    %cst_18 = arith.constant dense<0.000000e+00> : vector<2x32xf32>
    %21 = tpu.matmul %20, %3, %cst_18 {dimension_numbers = #tpu.dot_dimension_numbers<[1], [0], [0], [1], [0, 0, 1, 1], [], []>} : vector<2x9xf32>, vector<9x32xf32>, vector<2x32xf32> -> vector<2x32xf32>
    %22 = vector.broadcast %4 : vector<1x32xf32> to vector<2x32xf32>
    %23 = arith.addf %21, %22 : vector<2x32xf32>
    %cst_19 = arith.constant 0.000000e+00 : f32
    %24 = vector.broadcast %cst_19 : f32 to vector<2x32xf32>
    %25 = arith.maximumf %23, %24 : vector<2x32xf32>
    %26 = arith.truncf %25 : vector<2x32xf32> to vector<2x32xbf16>
    %c0_20 = arith.constant 0 : index
    %c0_21 = arith.constant 0 : index
    %27 = vector.load %arg7[%c0_20, %c0_21] : memref<2x32xf32, #tpu.memory_space<vmem>>, vector<2x32xf32>
    %c1_22 = arith.constant 1 : index
    %c0_23 = arith.constant 0 : index
    %c0_24 = arith.constant 0 : index
    %28 = vector.load %arg4[%c1_22, %c0_23, %c0_24] : memref<8x32x32xbf16, #tpu.memory_space<vmem>>, vector<1x32x32xbf16>
    %29 = vector.shape_cast %28 : vector<1x32x32xbf16> to vector<32x32xbf16>
    %cst_25 = arith.constant dense<0.000000e+00> : vector<2x32xf32>
    %30 = tpu.matmul %26, %29, %cst_25 {dimension_numbers = #tpu.dot_dimension_numbers<[1], [0], [0], [1], [0, 0, 1, 1], [], []>} : vector<2x32xbf16>, vector<32x32xbf16>, vector<2x32xf32> -> vector<2x32xf32>
    %31 = arith.addf %27, %30 : vector<2x32xf32>
    %c0_26 = arith.constant 0 : index
    %c0_27 = arith.constant 0 : index
    %32 = vector.load %arg7[%c0_26, %c0_27] : memref<2x32xf32, #tpu.memory_space<vmem>>, vector<2x32xf32>
    tpu.vector_store %arg7[%c0_26, %c0_27], %31 {strides = array<i32>} : memref<2x32xf32, #tpu.memory_space<vmem>>, vector<2x32xf32>,
    %c2 = arith.constant 2 : index
    %c0_28 = arith.constant 0 : index
    %c0_29 = arith.constant 0 : index
    %33 = vector.load %arg1[%c2, %c0_28, %c0_29] : memref<8x2x9xf32, #tpu.memory_space<vmem>>, vector<1x2x9xf32>
    %34 = vector.shape_cast %33 : vector<1x2x9xf32> to vector<2x9xf32>
    %cst_30 = arith.constant dense<0.000000e+00> : vector<2x32xf32>
    %35 = tpu.matmul %34, %3, %cst_30 {dimension_numbers = #tpu.dot_dimension_numbers<[1], [0], [0], [1], [0, 0, 1, 1], [], []>} : vector<2x9xf32>, vector<9x32xf32>, vector<2x32xf32> -> vector<2x32xf32>
    %36 = vector.broadcast %4 : vector<1x32xf32> to vector<2x32xf32>
    %37 = arith.addf %35, %36 : vector<2x32xf32>
    %cst_31 = arith.constant 0.000000e+00 : f32
    %38 = vector.broadcast %cst_31 : f32 to vector<2x32xf32>
    %39 = arith.maximumf %37, %38 : vector<2x32xf32>
    %40 = arith.truncf %39 : vector<2x32xf32> to vector<2x32xbf16>
    %c0_32 = arith.constant 0 : index
    %c0_33 = arith.constant 0 : index
    %41 = vector.load %arg7[%c0_32, %c0_33] : memref<2x32xf32, #tpu.memory_space<vmem>>, vector<2x32xf32>
    %c2_34 = arith.constant 2 : index
    %c0_35 = arith.constant 0 : index
    %c0_36 = arith.constant 0 : index
    %42 = vector.load %arg4[%c2_34, %c0_35, %c0_36] : memref<8x32x32xbf16, #tpu.memory_space<vmem>>, vector<1x32x32xbf16>
    %43 = vector.shape_cast %42 : vector<1x32x32xbf16> to vector<32x32xbf16>
    %cst_37 = arith.constant dense<0.000000e+00> : vector<2x32xf32>
    %44 = tpu.matmul %40, %43, %cst_37 {dimension_numbers = #tpu.dot_dimension_numbers<[1], [0], [0], [1], [0, 0, 1, 1], [], []>} : vector<2x32xbf16>, vector<32x32xbf16>, vector<2x32xf32> -> vector<2x32xf32>
    %45 = arith.addf %41, %44 : vector<2x32xf32>
    %c0_38 = arith.constant 0 : index
    %c0_39 = arith.constant 0 : index
    %46 = vector.load %arg7[%c0_38, %c0_39] : memref<2x32xf32, #tpu.memory_space<vmem>>, vector<2x32xf32>
    tpu.vector_store %arg7[%c0_38, %c0_39], %45 {strides = array<i32>} : memref<2x32xf32, #tpu.memory_space<vmem>>, vector<2x32xf32>,
    %c3 = arith.constant 3 : index
    %c0_40 = arith.constant 0 : index
    %c0_41 = arith.constant 0 : index
    %47 = vector.load %arg1[%c3, %c0_40, %c0_41] : memref<8x2x9xf32, #tpu.memory_space<vmem>>, vector<1x2x9xf32>
    %48 = vector.shape_cast %47 : vector<1x2x9xf32> to vector<2x9xf32>
    %cst_42 = arith.constant dense<0.000000e+00> : vector<2x32xf32>
    %49 = tpu.matmul %48, %3, %cst_42 {dimension_numbers = #tpu.dot_dimension_numbers<[1], [0], [0], [1], [0, 0, 1, 1], [], []>} : vector<2x9xf32>, vector<9x32xf32>, vector<2x32xf32> -> vector<2x32xf32>
    %50 = vector.broadcast %4 : vector<1x32xf32> to vector<2x32xf32>
    %51 = arith.addf %49, %50 : vector<2x32xf32>
    %cst_43 = arith.constant 0.000000e+00 : f32
    %52 = vector.broadcast %cst_43 : f32 to vector<2x32xf32>
    %53 = arith.maximumf %51, %52 : vector<2x32xf32>
    %54 = arith.truncf %53 : vector<2x32xf32> to vector<2x32xbf16>
    %c0_44 = arith.constant 0 : index
    %c0_45 = arith.constant 0 : index
    %55 = vector.load %arg7[%c0_44, %c0_45] : memref<2x32xf32, #tpu.memory_space<vmem>>, vector<2x32xf32>
    %c3_46 = arith.constant 3 : index
    %c0_47 = arith.constant 0 : index
    %c0_48 = arith.constant 0 : index
    %56 = vector.load %arg4[%c3_46, %c0_47, %c0_48] : memref<8x32x32xbf16, #tpu.memory_space<vmem>>, vector<1x32x32xbf16>
    %57 = vector.shape_cast %56 : vector<1x32x32xbf16> to vector<32x32xbf16>
    %cst_49 = arith.constant dense<0.000000e+00> : vector<2x32xf32>
    %58 = tpu.matmul %54, %57, %cst_49 {dimension_numbers = #tpu.dot_dimension_numbers<[1], [0], [0], [1], [0, 0, 1, 1], [], []>} : vector<2x32xbf16>, vector<32x32xbf16>, vector<2x32xf32> -> vector<2x32xf32>
    %59 = arith.addf %55, %58 : vector<2x32xf32>
    %c0_50 = arith.constant 0 : index
    %c0_51 = arith.constant 0 : index
    %60 = vector.load %arg7[%c0_50, %c0_51] : memref<2x32xf32, #tpu.memory_space<vmem>>, vector<2x32xf32>
    tpu.vector_store %arg7[%c0_50, %c0_51], %59 {strides = array<i32>} : memref<2x32xf32, #tpu.memory_space<vmem>>, vector<2x32xf32>,
    %c4 = arith.constant 4 : index
    %c0_52 = arith.constant 0 : index
    %c0_53 = arith.constant 0 : index
    %61 = vector.load %arg1[%c4, %c0_52, %c0_53] : memref<8x2x9xf32, #tpu.memory_space<vmem>>, vector<1x2x9xf32>
    %62 = vector.shape_cast %61 : vector<1x2x9xf32> to vector<2x9xf32>
    %cst_54 = arith.constant dense<0.000000e+00> : vector<2x32xf32>
    %63 = tpu.matmul %62, %3, %cst_54 {dimension_numbers = #tpu.dot_dimension_numbers<[1], [0], [0], [1], [0, 0, 1, 1], [], []>} : vector<2x9xf32>, vector<9x32xf32>, vector<2x32xf32> -> vector<2x32xf32>
    %64 = vector.broadcast %4 : vector<1x32xf32> to vector<2x32xf32>
    %65 = arith.addf %63, %64 : vector<2x32xf32>
    %cst_55 = arith.constant 0.000000e+00 : f32
    %66 = vector.broadcast %cst_55 : f32 to vector<2x32xf32>
    %67 = arith.maximumf %65, %66 : vector<2x32xf32>
    %68 = arith.truncf %67 : vector<2x32xf32> to vector<2x32xbf16>
    %c0_56 = arith.constant 0 : index
    %c0_57 = arith.constant 0 : index
    %69 = vector.load %arg7[%c0_56, %c0_57] : memref<2x32xf32, #tpu.memory_space<vmem>>, vector<2x32xf32>
    %c4_58 = arith.constant 4 : index
    %c0_59 = arith.constant 0 : index
    %c0_60 = arith.constant 0 : index
    %70 = vector.load %arg4[%c4_58, %c0_59, %c0_60] : memref<8x32x32xbf16, #tpu.memory_space<vmem>>, vector<1x32x32xbf16>
    %71 = vector.shape_cast %70 : vector<1x32x32xbf16> to vector<32x32xbf16>
    %cst_61 = arith.constant dense<0.000000e+00> : vector<2x32xf32>
    %72 = tpu.matmul %68, %71, %cst_61 {dimension_numbers = #tpu.dot_dimension_numbers<[1], [0], [0], [1], [0, 0, 1, 1], [], []>} : vector<2x32xbf16>, vector<32x32xbf16>, vector<2x32xf32> -> vector<2x32xf32>
    %73 = arith.addf %69, %72 : vector<2x32xf32>
    %c0_62 = arith.constant 0 : index
    %c0_63 = arith.constant 0 : index
    %74 = vector.load %arg7[%c0_62, %c0_63] : memref<2x32xf32, #tpu.memory_space<vmem>>, vector<2x32xf32>
    tpu.vector_store %arg7[%c0_62, %c0_63], %73 {strides = array<i32>} : memref<2x32xf32, #tpu.memory_space<vmem>>, vector<2x32xf32>,
    %c5 = arith.constant 5 : index
    %c0_64 = arith.constant 0 : index
    %c0_65 = arith.constant 0 : index
    %75 = vector.load %arg1[%c5, %c0_64, %c0_65] : memref<8x2x9xf32, #tpu.memory_space<vmem>>, vector<1x2x9xf32>
    %76 = vector.shape_cast %75 : vector<1x2x9xf32> to vector<2x9xf32>
    %cst_66 = arith.constant dense<0.000000e+00> : vector<2x32xf32>
    %77 = tpu.matmul %76, %3, %cst_66 {dimension_numbers = #tpu.dot_dimension_numbers<[1], [0], [0], [1], [0, 0, 1, 1], [], []>} : vector<2x9xf32>, vector<9x32xf32>, vector<2x32xf32> -> vector<2x32xf32>
    %78 = vector.broadcast %4 : vector<1x32xf32> to vector<2x32xf32>
    %79 = arith.addf %77, %78 : vector<2x32xf32>
    %cst_67 = arith.constant 0.000000e+00 : f32
    %80 = vector.broadcast %cst_67 : f32 to vector<2x32xf32>
    %81 = arith.maximumf %79, %80 : vector<2x32xf32>
    %82 = arith.truncf %81 : vector<2x32xf32> to vector<2x32xbf16>
    %c0_68 = arith.constant 0 : index
    %c0_69 = arith.constant 0 : index
    %83 = vector.load %arg7[%c0_68, %c0_69] : memref<2x32xf32, #tpu.memory_space<vmem>>, vector<2x32xf32>
    %c5_70 = arith.constant 5 : index
    %c0_71 = arith.constant 0 : index
    %c0_72 = arith.constant 0 : index
    %84 = vector.load %arg4[%c5_70, %c0_71, %c0_72] : memref<8x32x32xbf16, #tpu.memory_space<vmem>>, vector<1x32x32xbf16>
    %85 = vector.shape_cast %84 : vector<1x32x32xbf16> to vector<32x32xbf16>
    %cst_73 = arith.constant dense<0.000000e+00> : vector<2x32xf32>
    %86 = tpu.matmul %82, %85, %cst_73 {dimension_numbers = #tpu.dot_dimension_numbers<[1], [0], [0], [1], [0, 0, 1, 1], [], []>} : vector<2x32xbf16>, vector<32x32xbf16>, vector<2x32xf32> -> vector<2x32xf32>
    %87 = arith.addf %83, %86 : vector<2x32xf32>
    %c0_74 = arith.constant 0 : index
    %c0_75 = arith.constant 0 : index
    %88 = vector.load %arg7[%c0_74, %c0_75] : memref<2x32xf32, #tpu.memory_space<vmem>>, vector<2x32xf32>
    tpu.vector_store %arg7[%c0_74, %c0_75], %87 {strides = array<i32>} : memref<2x32xf32, #tpu.memory_space<vmem>>, vector<2x32xf32>,
    %c6 = arith.constant 6 : index
    %c0_76 = arith.constant 0 : index
    %c0_77 = arith.constant 0 : index
    %89 = vector.load %arg1[%c6, %c0_76, %c0_77] : memref<8x2x9xf32, #tpu.memory_space<vmem>>, vector<1x2x9xf32>
    %90 = vector.shape_cast %89 : vector<1x2x9xf32> to vector<2x9xf32>
    %cst_78 = arith.constant dense<0.000000e+00> : vector<2x32xf32>
    %91 = tpu.matmul %90, %3, %cst_78 {dimension_numbers = #tpu.dot_dimension_numbers<[1], [0], [0], [1], [0, 0, 1, 1], [], []>} : vector<2x9xf32>, vector<9x32xf32>, vector<2x32xf32> -> vector<2x32xf32>
    %92 = vector.broadcast %4 : vector<1x32xf32> to vector<2x32xf32>
    %93 = arith.addf %91, %92 : vector<2x32xf32>
    %cst_79 = arith.constant 0.000000e+00 : f32
    %94 = vector.broadcast %cst_79 : f32 to vector<2x32xf32>
    %95 = arith.maximumf %93, %94 : vector<2x32xf32>
    %96 = arith.truncf %95 : vector<2x32xf32> to vector<2x32xbf16>
    %c0_80 = arith.constant 0 : index
    %c0_81 = arith.constant 0 : index
    %97 = vector.load %arg7[%c0_80, %c0_81] : memref<2x32xf32, #tpu.memory_space<vmem>>, vector<2x32xf32>
    %c6_82 = arith.constant 6 : index
    %c0_83 = arith.constant 0 : index
    %c0_84 = arith.constant 0 : index
    %98 = vector.load %arg4[%c6_82, %c0_83, %c0_84] : memref<8x32x32xbf16, #tpu.memory_space<vmem>>, vector<1x32x32xbf16>
    %99 = vector.shape_cast %98 : vector<1x32x32xbf16> to vector<32x32xbf16>
    %cst_85 = arith.constant dense<0.000000e+00> : vector<2x32xf32>
    %100 = tpu.matmul %96, %99, %cst_85 {dimension_numbers = #tpu.dot_dimension_numbers<[1], [0], [0], [1], [0, 0, 1, 1], [], []>} : vector<2x32xbf16>, vector<32x32xbf16>, vector<2x32xf32> -> vector<2x32xf32>
    %101 = arith.addf %97, %100 : vector<2x32xf32>
    %c0_86 = arith.constant 0 : index
    %c0_87 = arith.constant 0 : index
    %102 = vector.load %arg7[%c0_86, %c0_87] : memref<2x32xf32, #tpu.memory_space<vmem>>, vector<2x32xf32>
    tpu.vector_store %arg7[%c0_86, %c0_87], %101 {strides = array<i32>} : memref<2x32xf32, #tpu.memory_space<vmem>>, vector<2x32xf32>,
    %c7 = arith.constant 7 : index
    %c0_88 = arith.constant 0 : index
    %c0_89 = arith.constant 0 : index
    %103 = vector.load %arg1[%c7, %c0_88, %c0_89] : memref<8x2x9xf32, #tpu.memory_space<vmem>>, vector<1x2x9xf32>
    %104 = vector.shape_cast %103 : vector<1x2x9xf32> to vector<2x9xf32>
    %cst_90 = arith.constant dense<0.000000e+00> : vector<2x32xf32>
    %105 = tpu.matmul %104, %3, %cst_90 {dimension_numbers = #tpu.dot_dimension_numbers<[1], [0], [0], [1], [0, 0, 1, 1], [], []>} : vector<2x9xf32>, vector<9x32xf32>, vector<2x32xf32> -> vector<2x32xf32>
    %106 = vector.broadcast %4 : vector<1x32xf32> to vector<2x32xf32>
    %107 = arith.addf %105, %106 : vector<2x32xf32>
    %cst_91 = arith.constant 0.000000e+00 : f32
    %108 = vector.broadcast %cst_91 : f32 to vector<2x32xf32>
    %109 = arith.maximumf %107, %108 : vector<2x32xf32>
    %110 = arith.truncf %109 : vector<2x32xf32> to vector<2x32xbf16>
    %c0_92 = arith.constant 0 : index
    %c0_93 = arith.constant 0 : index
    %111 = vector.load %arg7[%c0_92, %c0_93] : memref<2x32xf32, #tpu.memory_space<vmem>>, vector<2x32xf32>
    %c7_94 = arith.constant 7 : index
    %c0_95 = arith.constant 0 : index
    %c0_96 = arith.constant 0 : index
    %112 = vector.load %arg4[%c7_94, %c0_95, %c0_96] : memref<8x32x32xbf16, #tpu.memory_space<vmem>>, vector<1x32x32xbf16>
    %113 = vector.shape_cast %112 : vector<1x32x32xbf16> to vector<32x32xbf16>
    %cst_97 = arith.constant dense<0.000000e+00> : vector<2x32xf32>
    %114 = tpu.matmul %110, %113, %cst_97 {dimension_numbers = #tpu.dot_dimension_numbers<[1], [0], [0], [1], [0, 0, 1, 1], [], []>} : vector<2x32xbf16>, vector<32x32xbf16>, vector<2x32xf32> -> vector<2x32xf32>
    %115 = arith.addf %111, %114 : vector<2x32xf32>
    %c0_98 = arith.constant 0 : index
    %c0_99 = arith.constant 0 : index
    %116 = vector.load %arg7[%c0_98, %c0_99] : memref<2x32xf32, #tpu.memory_space<vmem>>, vector<2x32xf32>
    tpu.vector_store %arg7[%c0_98, %c0_99], %115 {strides = array<i32>} : memref<2x32xf32, #tpu.memory_space<vmem>>, vector<2x32xf32>,
    %c4_i32 = arith.constant 4 : i32
    %117 = arith.cmpi eq, %arg0, %c4_i32 : i32
    %118 = arith.extui %117 : i1 to i32
    %c0_i32_100 = arith.constant 0 : i32
    %119 = arith.cmpi ne, %118, %c0_i32_100 : i32
    scf.if %119 {
      %c0_101 = arith.constant 0 : index
      %c0_102 = arith.constant 0 : index
      %120 = vector.load %arg7[%c0_101, %c0_102] : memref<2x32xf32, #tpu.memory_space<vmem>>, vector<2x32xf32>
      %c0_103 = arith.constant 0 : index
      %c0_104 = arith.constant 0 : index
      %121 = vector.load %arg5[%c0_103, %c0_104] : memref<1x32xf32, #tpu.memory_space<vmem>>, vector<1x32xf32>
      %122 = vector.broadcast %121 : vector<1x32xf32> to vector<2x32xf32>
      %123 = arith.addf %120, %122 : vector<2x32xf32>
      %cst_105 = arith.constant 0.000000e+00 : f32
      %124 = vector.broadcast %cst_105 : f32 to vector<2x32xf32>
      %125 = arith.maximumf %123, %124 : vector<2x32xf32>
      %126 = arith.truncf %125 : vector<2x32xf32> to vector<2x32xbf16>
      %c0_106 = arith.constant 0 : index
      %c0_107 = arith.constant 0 : index
      %127 = vector.load %arg6[%c0_106, %c0_107] : memref<2x32xbf16, #tpu.memory_space<vmem>>, vector<2x32xbf16>
      tpu.vector_store %arg6[%c0_106, %c0_107], %126 {strides = array<i32>} : memref<2x32xbf16, #tpu.memory_space<vmem>>, vector<2x32xbf16>,
    } else {
    }
    return
  }
  func.func @transform_0(%arg0: i32) -> (i32, i32, i32) {
    %c0_i32 = arith.constant 0 : i32
    %c0_i32_0 = arith.constant 0 : i32
    %c0_i32_1 = arith.constant 0 : i32
    return %arg0, %c0_i32, %c0_i32_0 : i32, i32, i32
  }
  func.func @transform_1(%arg0: i32) -> (i32, i32) {
    %c0_i32 = arith.constant 0 : i32
    %c0_i32_0 = arith.constant 0 : i32
    %c0_i32_1 = arith.constant 0 : i32
    return %c0_i32, %c0_i32_0 : i32, i32
  }
  func.func @transform_2(%arg0: i32) -> (i32, i32) {
    %c0_i32 = arith.constant 0 : i32
    %c0_i32_0 = arith.constant 0 : i32
    %c0_i32_1 = arith.constant 0 : i32
    return %c0_i32, %c0_i32_0 : i32, i32
  }
  func.func @transform_3(%arg0: i32) -> (i32, i32, i32) {
    %c0_i32 = arith.constant 0 : i32
    %c0_i32_0 = arith.constant 0 : i32
    %c0_i32_1 = arith.constant 0 : i32
    return %arg0, %c0_i32, %c0_i32_0 : i32, i32, i32
  }
  func.func @transform_4(%arg0: i32) -> (i32, i32) {
    %c0_i32 = arith.constant 0 : i32
    %c0_i32_0 = arith.constant 0 : i32
    %c0_i32_1 = arith.constant 0 : i32
    return %c0_i32, %c0_i32_0 : i32, i32
  }
  func.func @transform_5(%arg0: i32) -> (i32, i32) {
    %c0_i32 = arith.constant 0 : i32
    %c0_i32_0 = arith.constant 0 : i32
    %c0_i32_1 = arith.constant 0 : i32
    return %c0_i32, %c0_i32_0 : i32, i32
  }
}

module attributes {stable_mosaic.version = 11 : i64} {
  func.func @head_kernel(%arg0: i32, %arg1: memref<2x32xbf16, #tpu.memory_space<vmem>>, %arg2: memref<32x256xbf16, #tpu.memory_space<vmem>>, %arg3: memref<1x256xf32, #tpu.memory_space<vmem>>, %arg4: memref<2x256xf32, #tpu.memory_space<vmem>>) attributes {dimension_semantics = [#tpu.dimension_semantics<parallel>], iteration_bounds = array<i64: 4>, scalar_prefetch = 0 : i64, scratch_operands = 0 : i64, tpu.core_type = #tpu.core_type<tc>, window_params = [{pipeline_mode = #tpu.pipeline_mode<synchronous>, transform_indices = @transform_0, window_bounds = array<i64: 2, 32>}, {transform_indices = @transform_1, window_bounds = array<i64: 32, 256>}, {transform_indices = @transform_2, window_bounds = array<i64: 1, 256>}, {transform_indices = @transform_3, window_bounds = array<i64: 2, 256>}]} {
    %c0 = arith.constant 0 : index
    %c0_0 = arith.constant 0 : index
    %0 = vector.load %arg1[%c0, %c0_0] : memref<2x32xbf16, #tpu.memory_space<vmem>>, vector<2x32xbf16>
    %c0_1 = arith.constant 0 : index
    %c0_2 = arith.constant 0 : index
    %1 = vector.load %arg2[%c0_1, %c0_2] : memref<32x256xbf16, #tpu.memory_space<vmem>>, vector<32x256xbf16>
    %cst = arith.constant dense<0.000000e+00> : vector<2x256xf32>
    %2 = tpu.matmul %0, %1, %cst {dimension_numbers = #tpu.dot_dimension_numbers<[1], [0], [0], [1], [0, 0, 1, 1], [], []>} : vector<2x32xbf16>, vector<32x256xbf16>, vector<2x256xf32> -> vector<2x256xf32>
    %c0_3 = arith.constant 0 : index
    %c0_4 = arith.constant 0 : index
    %3 = vector.load %arg3[%c0_3, %c0_4] : memref<1x256xf32, #tpu.memory_space<vmem>>, vector<1x256xf32>
    %4 = vector.broadcast %3 : vector<1x256xf32> to vector<2x256xf32>
    %5 = arith.addf %2, %4 : vector<2x256xf32>
    %6 = arith.negf %5 : vector<2x256xf32>
    %7 = math.exp %6 : vector<2x256xf32>
    %cst_5 = arith.constant 1.000000e+00 : f32
    %8 = vector.broadcast %cst_5 : f32 to vector<2x256xf32>
    %9 = arith.addf %8, %7 : vector<2x256xf32>
    %10 = arith.divf %8, %9 : vector<2x256xf32>
    %c0_6 = arith.constant 0 : index
    %c0_7 = arith.constant 0 : index
    %11 = vector.load %arg4[%c0_6, %c0_7] : memref<2x256xf32, #tpu.memory_space<vmem>>, vector<2x256xf32>
    tpu.vector_store %arg4[%c0_6, %c0_7], %10 {strides = array<i32>} : memref<2x256xf32, #tpu.memory_space<vmem>>, vector<2x256xf32>,
    return
  }
  func.func @transform_0(%arg0: i32) -> (i32, i32) {
    %c0_i32 = arith.constant 0 : i32
    %c0_i32_0 = arith.constant 0 : i32
    %c0_i32_1 = arith.constant 0 : i32
    return %c0_i32, %c0_i32_0 : i32, i32
  }
  func.func @transform_1(%arg0: i32) -> (i32, i32) {
    %c0_i32 = arith.constant 0 : i32
    %c0_i32_0 = arith.constant 0 : i32
    return %c0_i32, %arg0 : i32, i32
  }
  func.func @transform_2(%arg0: i32) -> (i32, i32) {
    %c0_i32 = arith.constant 0 : i32
    %c0_i32_0 = arith.constant 0 : i32
    return %c0_i32, %arg0 : i32, i32
  }
  func.func @transform_3(%arg0: i32) -> (i32, i32) {
    %c0_i32 = arith.constant 0 : i32
    %c0_i32_0 = arith.constant 0 : i32
    return %c0_i32, %arg0 : i32, i32
  }
}

</mosaic_0001>

<bundles_post_ra>
// kernel: conve_forward.3
= control target key start
LH: loop header
LB: loop body
LE: loop exit
PB: predicated region body
PF: predicated region fallthrough
CT: control target
= control target key end

     0   :  { %8 = vsyncpa [#allocation4], 0  ;;  %s698_s0 = inlined_call_operand.vmem [shape: bf16[2,32], index: 0, kind: input, shape index: {}]   ;;  %s699_s1 = inlined_call_operand.vmem [shape: bf16[32,1024], index: 1, kind: input, shape index: {}]   ;;  %s700_s2 = inlined_call_operand.vmem [shape: f32[1,1024], index: 2, kind: input, shape index: {}]   ;;  %s701_s3 = inlined_call_operand.hbm [shape: f32[2,1024], index: 3, kind: output, shape index: {}]  }
   0x1   :  { %10 = vsyncpa [#allocation4 + $0x1], 0  ;;  %s597_s12 = smov 0   ;;  %s599_s13 = smov 0  }
   0x2   :  { %s601_s14 = smov 0   ;;  %s603_s15 = smov 0  }
   0x3 LB: > { %s618_s16 = sadd.s32 4294967295, %s573_s15   ;;  %s434_s17 = sadd.s32 4294967294, %s573_s15   ;;  %s573_s15 = sphi %s603_s15, %s707_s15   ;;  %s569_s14 = sphi %s601_s14, %s706_s14   ;;  %s565_s13 = sphi %s599_s13, %s705_s13   ;;  %s561_s12 = sphi %s597_s12, %s704_s12  }
   0x4   : > { %s622_s18 = sadd.s32 1, %s573_s15   ;;  %s44_s19 = sadd.s32 1, %s569_s14 }
   0x5   : > { %s41_s20 = ssub.s32 %s573_s15, %s622_s18  ;;  %p51_p0 = scmp.ne.s32.totalorder %s569_s14, %s565_s13 }
   0x6   : > { %p42_p1 = scmp.eq.s32.totalorder %s41_s20, 0  ;;  %p52_p2 = scmp.eq.s32.totalorder %s573_s15, 0 }
   0x7   : > { %p107_p3 = scmp.eq.s32.totalorder %s618_s16, 3  ;;  %p112_p4 = scmp.ne.s32.totalorder %s565_s13, %s561_s12 }
   0x8   : > { %s634_s21 = scalar_select %p42_p1, %s569_s14, %s44_s19  }
   0x9   : > { %p53_p5 = por %p52_p2, %p51_p0  ;;  %p636_p6 = por %p107_p3, %p51_p0 }
   0xa   : > { %p113_p7 = scmp.eq.s32.totalorder %s434_s17, 3  ;;  %p436_p9 = scmp.ge.s32.totalorder %s573_s15, 4 }
   0xc   : > { %p640_p8 = por %p113_p7, %p112_p4  ;;  %132 = sbr.rel (%p436_p9) target bundleno = 25 (0x19), region = 20 }
  0x11   : > { %135 = sbr.rel (!%p53_p5) target bundleno = 25 (0x19), region = 24  ;;  %s137_s24 = sand.u32 (%p53_p5), 1, %s569_s14  }
  0x12   : > { %s457_s25 = sshll.u32 (%p53_p5), %s573_s15, 3  ;;  %s437_s26 = sshll.u32 (%p53_p5), %s137_s24, 5 }
  0x13   : > { %s142_s29 = scalar_lea.vmem (%p53_p5), %s699_s1, %s457_s25  ;;  %s139_s30 = scalar_lea.vmem (%p53_p5), [#allocation2], %s437_s26 }
  0x14   : > { %v177_v0 = vld [vmem:[%s142_s29] sm:$0xff] (%p53_p5) }
  0x15   : > { %v179_v1 = vld [vmem:[%s142_s29 + $0x20] sm:$0xff] (%p53_p5)  ;;  %178 = vst [vmem:[%s139_s30] sm:$0xff] (%p53_p5), %v177_v0 }
  0x16   : > { %v181_v2 = vld [vmem:[%s142_s29 + $0x40] sm:$0xff]  ;;  %180 = vst [vmem:[%s139_s30 + $0x8] sm:$0xff] %v179_v1 }
  0x17   : > { %182 = vst [vmem:[%s139_s30 + $0x10] sm:$0xff] %v181_v2  ;;  %v183_v3 = vld [vmem:[%s142_s29 + $0x60] sm:$0xff] }
  0x18   : > { %184 = vst [vmem:[%s139_s30 + $0x18] sm:$0xff] %v183_v3 }
  0x19 PF: > { %p440_p10 = scmp.ge.s32.totalorder %s573_s15, 1  ;;  %p197_p11 = scmp.lt.s32.totalorder %s573_s15, 5 }
  0x1b   : > { %p198_p12 = pnand %p440_p10, %p197_p11 }
  0x1c   : > { %s653_s4 = sand.u32 (!%p198_p12), 1, %s565_s13   ;;  %s443_s9 = sshll.u32 (!%p198_p12), %s618_s16, 1 }
  0x1d   : > { %201 = sbr.rel (%p198_p12) target bundleno = 287 (0x11f), region = 66  ;;  %s441_s5 = sshll.u32 (!%p198_p12), %s653_s4, 5 }
  0x1e   : > { %s206_s6 = scalar_lea.vmem (!%p198_p12), [#allocation2], %s441_s5  ;;  %p233_p13 = scmp.lt.s32.totalorder (!%p198_p12), %s443_s9, 7 }
  0x1f   : > { %s442_s19 = sshll.u32 (!%p198_p12), %s653_s4, 2  ;;  %s458_s20 = sshll.u32 (!%p198_p12), %s618_s16, 6 }
  0x20   : > { %s230_s24 = scalar_lea.vmem (!%p198_p12), [#allocation3], %s442_s19  ;;  %s358_s28 = scalar_lea.hbm (!%p198_p12), %s701_s3, %s458_s20 }
  0x21   : > { %s360_s25 = sshll.u32 (!%p198_p12), %s230_s24, 4  ;;  %s346_s29 = scalar_lea.sflag (!%p198_p12), [#allocation4], %s653_s4  ;;  %s361_s25 = int_to_ptr.vmem [resolvable:$true] %s360_s25 }
  0x22   : > { %v575_v4 = vmov 0   ;;  %v499_v5 = vld [vmem:[%s206_s6 + $0x14] ss:$8 sps:$4 sm:$0xff]   ;;  %v501_v6 = vld [vmem:[%s206_s6 + $0x10] ss:$8 sps:$4 sm:$0xff]   ;;  %vm276_vm0 = vcmask 261120   ;;  %v246_v10 = vlaneseq }
  0x23   : > { %312 = vmatprep.mubr.bf16.mxu0 %v575_v4  ;;  %292 = vmatprep.subr.bf16.mxu0 %v499_v5  ;;  %v502_v7 = vld [vmem:[%s206_s6 + $0x4] ss:$8 sps:$4 sm:$0xff]   ;;  %v504_v8 = vld [vmem:[%s206_s6] ss:$8 sps:$4 sm:$0xff]   ;;  %s709_s9 = smov (!%p233_p13, %s443_s9), 7  ;;  %s513_s30 = scalar_lea.vmem %s361_s25, 64 }
  0x24   : > { %293 = vmatpush1.bf16.msra.mxu0 %v501_v6  ;;  %v239_v9 = vld [vmem:[%s698_s0] sm:$0x1]  ;;  %v247_v11 = vshrl.u32 %v246_v10, 7  ;;  %s235_s17 = scalar_lea.vmem %s700_s2, %s709_s9  ;;  %p514_p0 = scmp.ne.s32.totalorder %s361_s25, %s513_s30 }
  0x25   : > { %294 = vmatprep.subr.bf16.mxu0 %v502_v7  ;;  %v244_v13 = vld [vmem:[%s235_s17] sm:$0x3]  ;;  %s576_s5 = smov [#allocation3]  }
  0x26   : > { %v248_v12 = vsub.s32 0, %v247_v11  ;;  %v252_v14 = vsub.s32 1, %v247_v11  ;;  %p515_p1 = pnand %p514_p0, %p636_p6  ;;  %s517_s6 = sshll.u32 %s576_s5, 4  ;;  %s518_s6 = int_to_ptr.vmem [resolvable:$false] %s517_s6 }
  0x27   : > { %s519_s16 = scalar_lea.vmem %s518_s6, 128  ;;  %p520_p3 = scmp.lt.s32.totalorder %s361_s25, %s518_s6 }
  0x28   : > { %295 = vmatpush1.bf16.msra.mxu0 %v504_v8  ;;  %v249_v15 = vrot.slane %v244_v13, %v248_v12  ;;  %v253_v16 = vrot.slane %v244_v13, %v252_v14  ;;  %p516_p2 = pneg %p515_p1  ;;  %p521_p4 = scmp.lt.s32.totalorder %s519_s16, %s513_s30 }
  0x2a   : > { %p522_p5 = por %p521_p4, %p520_p3 }
  0x2b   : > { %448 = vmatmul.mubr.msk.bf16.vlgmr.msra.gmra.mxu0 %vm276_vm0, %v239_v9 }
  0x2c   : > { %p523_p7 = pnand %p522_p5, %p516_p2 }
  0xeb   : > { %v314_v17 = vpop.f32.mrf.mxu0 }
  0xec   : > { %v315_v18 = vadd.f32 %v314_v17, %v249_v15 }
  0xed   : > { %v316_v19 = vpop.f32.mrf.mxu0 }
  0xee   : > { %v449_v20 = vmul.f32 -1.442695, %v315_v18  ;;  %v317_v21 = vadd.f32 %v316_v19, %v253_v16 }
  0xef   : > { %v318_v22 = vpop.f32.mrf.mxu0 }
  0xf0   : > { %505 = vpow2.f32 %v449_v20  ;;  %v450_v23 = vmul.f32 -1.442695, %v317_v21 }
  0xf1   : > { %v319_v24 = vpop.f32.mrf.mxu0 }
  0xf2   : > { %507 = vpow2.f32 %v450_v23 }
  0xfd   : > { %v506_v25 = vpop.eup %505 }
  0xfe   : > { %v327_v26 = vadd.f32 1.0, %v506_v25 }
  0xff   : > { %v508_v27 = vpop.eup %507 }
 0x100   : > { %v328_v28 = vadd.f32 1.0, %v508_v27  ;;  %509 = vrcp.f32 %v327_v26 }
 0x102   : > { %511 = vrcp.f32 %v328_v28 }
 0x10d   : > { %v510_v29 = vpop.eup %509 }
 0x10f   : > { %v512_v30 = vpop.eup %511 }
 0x110   : > { %v335_v31 = vcombine.low %v510_v29, %v512_v30 }
 0x112   : > { %451 = vst.sshfl [vmem:[%s230_s24] sm:$0x33 pattern:$0x76325410] %v335_v31 }
 0x113   : > { %526 = shalt.err (!%p523_p7)
}
 0x114   : > { %s527_s7 = scalar_lea.hbm %s358_s28, 64  ;;  %s531_s9 = scalar_lea.hbm %s701_s3, 256 }
 0x115   : > { %p528_p9 = scmp.ne.s32.totalorder %s358_s28, %s527_s7  ;;  %p532_p12 = scmp.lt.s32.totalorder %s358_s28, %s701_s3 }
 0x116   : > { %p533_p13 = scmp.lt.s32.totalorder %s531_s9, %s527_s7 }
 0x117   : > { %p529_p10 = pnand %p528_p9, %p636_p6 }
 0x118   : > { %p534_p0 = por %p533_p13, %p532_p12 }
 0x119   : > { %p530_p11 = pneg %p529_p10 }
 0x11b   : > { %p535_p1 = pnand %p534_p0, %p530_p11 }
 0x11d   : > { %538 = shalt.err (!%p535_p1)
}
 0x11e   : > { %459 = dma.vmem_to_hbm [thread:$0]  (%p636_p6), %s361_s25, 64, %s358_s28, %s346_s29  }
 0x11f PF: > { %p465_p2 = scmp.ge.s32.totalorder %s573_s15, 2  ;;  %s372_s17 = sand.u32 1, %s561_s12  }
 0x120   : > { %s373_s19 = scalar_lea.sflag [#allocation4], %s372_s17 }
 0x121   : > { %p462_p3 = pnand %p465_p2, %p640_p8 }
 0x123   : > { %p463_p4 = pneg %p462_p3 }
 0x125   : > { %556 = dma.done.wait (%p463_p4), %s373_s19, 64  }
 0x126   : > { %558 = vsyncadd (%p463_p4), %s373_s19, 4294967232  ;;  %p13_p5 = scmp.ge.s32.totalorder %s622_s18, 6   ;;  %s704_s12 = smov %s565_s13 }
 0x127   : > { %s705_s13 = smov %s569_s14  ;;  %s706_s14 = smov %s634_s21 }
 0x128   : > { %s707_s15 = smov %s622_s18  ;;  %15 = sbr.rel (!%p13_p5) target bundleno = 3 (0x3), region = 113 }
 0x12d   :  { %378 = vsyncpa [#allocation4], 1 }
 0x12e   :  { %380 = vsyncpa [#allocation4 + $0x1], 1 }

// kernel: conve_forward.2
= control target key start
LH: loop header
LB: loop body
LE: loop exit
PB: predicated region body
PF: predicated region fallthrough
CT: control target
= control target key end

     0   :  { %s1762_s18 = smov 0   ;;  %s1953_s0 = inlined_call_operand.vmem [shape: f32[40,2,9], index: 0, kind: input, shape index: {}]   ;;  %s1954_s1 = inlined_call_operand.vmem [shape: f32[9,32], index: 1, kind: input, shape index: {}]   ;;  %s1955_s2 = inlined_call_operand.vmem [shape: f32[1,32], index: 2, kind: input, shape index: {}]   ;;  %s1956_s3 = inlined_call_operand.vmem [shape: bf16[40,32,32], index: 3, kind: input, shape index: {}]   ;;  %s1957_s4 = inlined_call_operand.vmem [shape: f32[1,32], index: 4, kind: input, shape index: {}]   ;;  %s1958_s5 = inlined_call_operand.vmem [shape: bf16[2,32], index: 5, kind: output, shape index: {}]  }
   0x1 LB: > { %s1768_s19 = sadd.s32 4294967295, %s1727_s18   ;;  %p1438_p0 = scmp.ge.s32.totalorder %s1727_s18, 1  ;;  %s1727_s18 = sphi %s1762_s18, %s15_s18  }
   0x2   : > { %p195_p1 = scmp.lt.s32.totalorder %s1727_s18, 6 }
   0x4   : > { %p196_p2 = pnand %p1438_p0, %p195_p1 }
   0x5   : > { %s1439_s20 = sshll.u32 (!%p196_p2), %s1768_s19, 3  ;;  %p1444_p4 = scmp.ne.s32.totalorder (!%p196_p2), %s1768_s19, 0 }
   0x6   : > { %199 = sbr.rel (%p196_p2) target bundleno = 1063 (0x427), region = 40  ;;  %p225_p3 = scmp.lt.s32.totalorder (!%p196_p2), %s1439_s20, 39 }
   0xb   : > { %s1960_s20 = smov (!%p225_p3, %s1439_s20), 39  ;;  %241 = sbr.rel (%p1444_p4) target bundleno = 18 (0x12), region = 44 }
   0xc   : > { %s1440_s21 = sshll.u32 %s1960_s20, 1  ;;  %s1525_s22 = sshll.u32 %s1960_s20, 4 }
   0xd   : > { %s1776_s25 = scalar_lea.vmem %s1953_s0, %s1440_s21  ;;  %s1781_s28 = scalar_lea.vmem %s1956_s3, %s1525_s22 }
  0x10   : > { %vm242_vm0 = vcmask 254976   ;;  %v1729_v0 = vmov 0.0  }
  0x11   : > { %243 = vst.msk [vmem:[#allocation2] sm:$0x3] %vm242_vm0, %v1729_v0 }
  0x12 PF: > { %v1787_v1 = vld [vmem:[%s1954_s1 + $0x8] sm:$0x1]  ;;  %vm258_vm1 = vcmask 1040384   ;;  %v1730_v2 = vmov 0.0   ;;  %v1793_v3 = vld [vmem:[%s1954_s1] sm:$0xff]  ;;  %vm1731_vm2 = vmmov 0  }
  0x13   : > { %1574 = vmatprep.subr.mxu0 %v1730_v2  ;;  %1578 = vmatprep.mubr.msk.f32.mxu0 %vm1731_vm2, %v1730_v2  ;;  %v247_v4 = vld [vmem:[%s1776_s25] sm:$0x3]  ;;  %v1705_v5 = vld [vmem:[%s1781_s28 + $0x8] sm:$0xff]   ;;  %vm254_vm3 = vcmask 72704   ;;  %v1451_v6 = vld [vmem:[%s1776_s25 + $0x2] sm:$0x3] }
  0x14   : > { %1575 = vmatpush3.msk.msra.mxu0 %vm258_vm1, %v1787_v1  ;;  %1581 = vmatprep.subr.bf16.mxu1 %v1730_v2  ;;  %v1706_v7 = vld [vmem:[%s1781_s28] sm:$0xff]   ;;  %v1707_v8 = vld [vmem:[%s1781_s28 + $0x18] sm:$0xff]   ;;  %v1708_v9 = vld [vmem:[%s1781_s28 + $0x10] sm:$0xff]   ;;  %vm351_vm4 = vcmask 261120   ;;  %vm396_vm5 = vcmask 254976   ;;  %p1521_p5 = scmp.ne.s32.totalorder %s1768_s19, 4 }
  0x15   : > { %1576 = vmatprep.subr.mxu0 %v1730_v2  ;;  %1582 = vmatpush3.bf16.msra.mxu1 %v1705_v5  ;;  %v1829_v10 = vld [vmem:[%s1955_s2] ss:$0 sm:$0xff]  ;;  %v1461_v21 = vld [vmem:[%s1776_s25 + $0x4] sm:$0x3]  ;;  %v1471_v22 = vld [vmem:[%s1776_s25 + $0x6] sm:$0x3] }
  0x16   : > { %1577 = vmatpush3.msra.mxu0 %v1793_v3  ;;  %1583 = vmatprep.subr.bf16.mxu1 %v1730_v2  ;;  %v1709_v23 = vld [vmem:[%s1781_s28 + $0x28] sm:$0xff]   ;;  %v1710_v24 = vld [vmem:[%s1781_s28 + $0x20] sm:$0xff]   ;;  %v1711_v25 = vld [vmem:[%s1781_s28 + $0x38] sm:$0xff]  }
  0x17   : > { %1579 = vmatmul.mubr.msk.f32.vlgmr.msra.gmra.mxu0 %vm254_vm3, %v247_v4  ;;  %1589 = vmatprep.subr.mxu0 %v1730_v2  ;;  %v1712_v26 = vld [vmem:[%s1781_s28 + $0x30] sm:$0xff]   ;;  %v1481_v49 = vld [vmem:[%s1776_s25 + $0x8] sm:$0x3]  ;;  %v1491_v50 = vld [vmem:[%s1776_s25 + $0xa] sm:$0x3] }
  0x18   : > { %1590 = vmatpush3.msk.msra.mxu0 %vm258_vm1, %v1787_v1  ;;  %1593 = vmatprep.mubr.msk.f32.mxu0 %vm1731_vm2, %v1730_v2  ;;  %v334_v27 = vld [vmem:[#allocation2] sm:$0x3]  ;;  %v1713_v51 = vld [vmem:[%s1781_s28 + $0x48] sm:$0xff]   ;;  %v1715_v53 = vld [vmem:[%s1781_s28 + $0x58] sm:$0xff]  }
  0x19   : > { %1591 = vmatprep.subr.mxu0 %v1730_v2  ;;  %1585 = vmatprep.mubr.msk.bf16.mxu1 %vm1731_vm2, %v1730_v2  ;;  %v1714_v52 = vld [vmem:[%s1781_s28 + $0x40] sm:$0xff]   ;;  %v1716_v54 = vld [vmem:[%s1781_s28 + $0x50] sm:$0xff]  }
  0x1a   : > { %1592 = vmatpush3.msra.mxu0 %v1793_v3  ;;  %1584 = vmatpush3.bf16.msra.mxu1 %v1706_v7 }
  0x1b   : > { %1594 = vmatmul.mubr.msk.f32.vlgmr.msra.gmra.mxu0 %vm254_vm3, %v1451_v6  ;;  %1596 = vmatprep.subr.bf16.mxu0 %v1730_v2 }
  0x1c   : > { %1600 = vmatprep.mubr.msk.bf16.mxu0 %vm1731_vm2, %v1730_v2  ;;  %1604 = vmatprep.subr.mxu1 %v1730_v2 }
  0x1d   : > { %1597 = vmatpush3.bf16.msra.mxu0 %v1707_v8 }
  0x1e   : > { %1598 = vmatprep.subr.bf16.mxu0 %v1730_v2 }
  0x21   : > { %1599 = vmatpush3.bf16.msra.mxu0 %v1708_v9 }
  0x22   : > { %1611 = vmatprep.subr.bf16.mxu0 %v1730_v2 }
  0xd7   : > { %v328_v11 = vpop.f32.mrf.mxu0 }
  0xd8   : > { %v329_v12 = vadd.f32 %v1829_v10, %v328_v11 }
  0xd9   : > { %v1580_v13 = vpop.f32.mrf.mxu0 }
  0xda   : > { %v332_v14 = vmax.f32 %v329_v12, 0.0 }
  0xdb   : > { %v469_v15 = vpop.f32.mrf.mxu0 }
  0xdc   : > { %v333_v16 = vpack.c.bf16 %v332_v14, %v332_v14  ;;  %v470_v17 = vadd.f32 %v1829_v10, %v469_v15 }
  0xdd   : > { %v1595_v18 = vpop.f32.mrf.mxu0 }
  0xde   : > { %1586 = vmatmul.mubr.msk.bf16.vlgmr.msra.gmra.mxu1 %vm351_vm4, %v333_v16  ;;  %v473_v19 = vmax.f32 %v470_v17, 0.0  ;;  %v1501_v17 = vld [vmem:[%s1776_s25 + $0xc] sm:$0x3]  ;;  %v1511_v18 = vld [vmem:[%s1776_s25 + $0xe] sm:$0x3] }
  0xdf   : > { %1605 = vmatpush3.msk.msra.mxu1 %vm258_vm1, %v1787_v1  ;;  %1608 = vmatprep.mubr.msk.f32.mxu1 %vm1731_vm2, %v1730_v2 }
  0xe0   : > { %v474_v20 = vpack.c.bf16 %v473_v19, %v473_v19  ;;  %1606 = vmatprep.subr.mxu1 %v1730_v2  ;;  %v1717_v19 = vld [vmem:[%s1781_s28 + $0x68] sm:$0xff]  }
  0xe1   : > { %1607 = vmatpush3.msra.mxu1 %v1793_v3 }
  0xe2   : > { %1601 = vmatmul.mubr.msk.bf16.vlgmr.msra.gmra.mxu0 %vm351_vm4, %v474_v20  ;;  %1619 = vmatprep.subr.mxu1 %v1730_v2  ;;  %v1719_v20 = vld [vmem:[%s1781_s28 + $0x78] sm:$0xff]  }
  0xe3   : > { %1615 = vmatprep.mubr.msk.bf16.mxu0 %vm1731_vm2, %v1730_v2  ;;  %1612 = vmatpush3.bf16.msra.mxu0 %v1709_v23 }
  0xe4   : > { %1613 = vmatprep.subr.bf16.mxu0 %v1730_v2 }
  0xe6   : > { %1609 = vmatmul.mubr.msk.f32.vlgmr.msra.gmra.mxu1 %vm254_vm3, %v1461_v21  ;;  %v1720_v21 = vld [vmem:[%s1781_s28 + $0x70] sm:$0xff]  }
  0xe7   : > { %1620 = vmatpush3.msk.msra.mxu1 %vm258_vm1, %v1787_v1  ;;  %1623 = vmatprep.mubr.msk.f32.mxu1 %vm1731_vm2, %v1730_v2 }
  0xe8   : > { %1621 = vmatprep.subr.mxu1 %v1730_v2  ;;  %1614 = vmatpush3.bf16.msra.mxu0 %v1710_v24 }
  0xe9   : > { %1622 = vmatpush3.msra.mxu1 %v1793_v3  ;;  %1634 = vmatprep.subr.mxu0 %v1730_v2 }
  0xea   : > { %1624 = vmatmul.mubr.msk.f32.vlgmr.msra.gmra.mxu1 %vm254_vm3, %v1471_v22  ;;  %1626 = vmatprep.subr.bf16.mxu1 %v1730_v2 }
  0xeb   : > { %1630 = vmatprep.mubr.msk.bf16.mxu1 %vm1731_vm2, %v1730_v2  ;;  %1627 = vmatpush3.bf16.msra.mxu1 %v1711_v25 }
  0xec   : > { %1628 = vmatprep.subr.bf16.mxu1 %v1730_v2 }
  0xef   : > { %1629 = vmatpush3.bf16.msra.mxu1 %v1712_v26 }
  0xf0   : > { %1641 = vmatprep.subr.bf16.mxu1 %v1730_v2 }
 0x19e   : > { %v389_v28 = vpop.f32.mrf.mxu1 }
 0x19f   : > { %v395_v29 = vadd.f32 %v389_v28, %v334_v27 }
 0x1a0   : > { %v1587_v30 = vpop.f32.mrf.mxu1 }
 0x1a1   : > { %397 = vst.msk [vmem:[#allocation2] sm:$0x3] %vm396_vm5, %v395_v29 }
 0x1a2   : > { %v392_v31 = vpop.f32.mrf.mxu1  ;;  %v530_v32 = vpop.f32.mrf.mxu0 }
 0x1a4   : > { %v1588_v33 = vpop.f32.mrf.mxu1  ;;  %v1602_v34 = vpop.f32.mrf.mxu0 }
 0x1a6   : > { %v609_v35 = vpop.f32.mrf.mxu1  ;;  %v533_v36 = vpop.f32.mrf.mxu0 }
 0x1a7   : > { %v610_v37 = vadd.f32 %v1829_v10, %v609_v35 }
 0x1a8   : > { %v475_v38 = vld [vmem:[#allocation2] sm:$0x3]  ;;  %v1610_v39 = vpop.f32.mrf.mxu1  ;;  %v1603_v40 = vpop.f32.mrf.mxu0 }
 0x1a9   : > { %v613_v41 = vmax.f32 %v610_v37, 0.0  ;;  %v536_v42 = vadd.f32 %v530_v32, %v475_v38 }
 0x1aa   : > { %v749_v43 = vpop.f32.mrf.mxu1 }
 0x1ab   : > { %v614_v44 = vpack.c.bf16 %v613_v41, %v613_v41  ;;  %537 = vst.msk [vmem:[#allocation2] sm:$0x3] %vm396_vm5, %v536_v42  ;;  %v750_v45 = vadd.f32 %v1829_v10, %v749_v43 }
 0x1ac   : > { %v1625_v46 = vpop.f32.mrf.mxu1 }
 0x1ad   : > { %1616 = vmatmul.mubr.msk.bf16.vlgmr.msra.gmra.mxu0 %vm351_vm4, %v614_v44  ;;  %v753_v47 = vmax.f32 %v750_v45, 0.0 }
 0x1ae   : > { %1635 = vmatpush3.msk.msra.mxu0 %vm258_vm1, %v1787_v1  ;;  %1638 = vmatprep.mubr.msk.f32.mxu0 %vm1731_vm2, %v1730_v2 }
 0x1af   : > { %v754_v48 = vpack.c.bf16 %v753_v47, %v753_v47  ;;  %1636 = vmatprep.subr.mxu0 %v1730_v2 }
 0x1b0   : > { %1637 = vmatpush3.msra.mxu0 %v1793_v3 }
 0x1b1   : > { %1631 = vmatmul.mubr.msk.bf16.vlgmr.msra.gmra.mxu1 %vm351_vm4, %v754_v48  ;;  %1649 = vmatprep.subr.mxu0 %v1730_v2 }
 0x1b2   : > { %1645 = vmatprep.mubr.msk.bf16.mxu1 %vm1731_vm2, %v1730_v2  ;;  %1642 = vmatpush3.bf16.msra.mxu1 %v1713_v51  ;;  %v615_v55 = vld [vmem:[#allocation2] sm:$0x3] }
 0x1b3   : > { %1643 = vmatprep.subr.bf16.mxu1 %v1730_v2 }
 0x1b5   : > { %1639 = vmatmul.mubr.msk.f32.vlgmr.msra.gmra.mxu0 %vm254_vm3, %v1481_v49 }
 0x1b6   : > { %1650 = vmatpush3.msk.msra.mxu0 %vm258_vm1, %v1787_v1  ;;  %1653 = vmatprep.mubr.msk.f32.mxu0 %vm1731_vm2, %v1730_v2 }
 0x1b7   : > { %1651 = vmatprep.subr.mxu0 %v1730_v2  ;;  %1644 = vmatpush3.bf16.msra.mxu1 %v1714_v52 }
 0x1b8   : > { %1652 = vmatpush3.msra.mxu0 %v1793_v3  ;;  %1664 = vmatprep.subr.mxu1 %v1730_v2 }
 0x1b9   : > { %1654 = vmatmul.mubr.msk.f32.vlgmr.msra.gmra.mxu0 %vm254_vm3, %v1491_v50  ;;  %1656 = vmatprep.subr.bf16.mxu0 %v1730_v2 }
 0x1ba   : > { %1660 = vmatprep.mubr.msk.bf16.mxu0 %vm1731_vm2, %v1730_v2  ;;  %1657 = vmatpush3.bf16.msra.mxu0 %v1715_v53 }
 0x1bb   : > { %1658 = vmatprep.subr.bf16.mxu0 %v1730_v2 }
 0x1be   : > { %1659 = vmatpush3.bf16.msra.mxu0 %v1716_v54 }
 0x1bf   : > { %1671 = vmatprep.subr.bf16.mxu0 %v1730_v2 }
 0x26d   : > { %v670_v56 = vpop.f32.mrf.mxu0 }
 0x26e   : > { %v676_v57 = vadd.f32 %v670_v56, %v615_v55 }
 0x26f   : > { %v1617_v58 = vpop.f32.mrf.mxu0 }
 0x270   : > { %677 = vst.msk [vmem:[#allocation2] sm:$0x3] %vm396_vm5, %v676_v57 }
 0x271   : > { %v673_v59 = vpop.f32.mrf.mxu0  ;;  %v810_v60 = vpop.f32.mrf.mxu1 }
 0x273   : > { %v1618_v61 = vpop.f32.mrf.mxu0  ;;  %v1632_v62 = vpop.f32.mrf.mxu1 }
 0x275   : > { %v889_v63 = vpop.f32.mrf.mxu0  ;;  %v813_v0 = vpop.f32.mrf.mxu1 }
 0x276   : > { %v890_v4 = vadd.f32 %v1829_v10, %v889_v63 }
 0x277   : > { %v755_v5 = vld [vmem:[#allocation2] sm:$0x3]  ;;  %v1640_v6 = vpop.f32.mrf.mxu0  ;;  %v1633_v7 = vpop.f32.mrf.mxu1 }
 0x278   : > { %v893_v8 = vmax.f32 %v890_v4, 0.0  ;;  %v816_v9 = vadd.f32 %v810_v60, %v755_v5 }
 0x279   : > { %v1029_v11 = vpop.f32.mrf.mxu0 }
 0x27a   : > { %v894_v12 = vpack.c.bf16 %v893_v8, %v893_v8  ;;  %817 = vst.msk [vmem:[#allocation2] sm:$0x3] %vm396_vm5, %v816_v9  ;;  %v1030_v13 = vadd.f32 %v1829_v10, %v1029_v11 }
 0x27b   : > { %v1655_v14 = vpop.f32.mrf.mxu0 }
 0x27c   : > { %1646 = vmatmul.mubr.msk.bf16.vlgmr.msra.gmra.mxu1 %vm351_vm4, %v894_v12  ;;  %v1033_v15 = vmax.f32 %v1030_v13, 0.0 }
 0x27d   : > { %1665 = vmatpush3.msk.msra.mxu1 %vm258_vm1, %v1787_v1  ;;  %1668 = vmatprep.mubr.msk.f32.mxu1 %vm1731_vm2, %v1730_v2 }
 0x27e   : > { %v1034_v16 = vpack.c.bf16 %v1033_v15, %v1033_v15  ;;  %1666 = vmatprep.subr.mxu1 %v1730_v2 }
 0x27f   : > { %1667 = vmatpush3.msra.mxu1 %v1793_v3 }
 0x280   : > { %1679 = vmatprep.subr.mxu1 %v1730_v2  ;;  %1661 = vmatmul.mubr.msk.bf16.vlgmr.msra.gmra.mxu0 %vm351_vm4, %v1034_v16 }
 0x281   : > { %1675 = vmatprep.mubr.msk.bf16.mxu0 %vm1731_vm2, %v1730_v2  ;;  %1672 = vmatpush3.bf16.msra.mxu0 %v1717_v19 }
 0x282   : > { %1673 = vmatprep.subr.bf16.mxu0 %v1730_v2 }
 0x284   : > { %1669 = vmatmul.mubr.msk.f32.vlgmr.msra.gmra.mxu1 %vm254_vm3, %v1501_v17 }
 0x285   : > { %1680 = vmatpush3.msk.msra.mxu1 %vm258_vm1, %v1787_v1  ;;  %1683 = vmatprep.mubr.msk.f32.mxu1 %vm1731_vm2, %v1730_v2  ;;  %v1718_v1 = vld [vmem:[%s1781_s28 + $0x60] sm:$0xff]  }
 0x286   : > { %1681 = vmatprep.subr.mxu1 %v1730_v2  ;;  %1674 = vmatpush3.bf16.msra.mxu0 %v1718_v1 }
 0x287   : > { %1682 = vmatpush3.msra.mxu1 %v1793_v3  ;;  %v895_v3 = vld [vmem:[#allocation2] sm:$0x3] }
 0x288   : > { %1684 = vmatmul.mubr.msk.f32.vlgmr.msra.gmra.mxu1 %vm254_vm3, %v1511_v18  ;;  %1686 = vmatprep.subr.bf16.mxu1 %v1730_v2 }
 0x289   : > { %1690 = vmatprep.mubr.msk.bf16.mxu1 %vm1731_vm2, %v1730_v2  ;;  %1687 = vmatpush3.bf16.msra.mxu1 %v1719_v20 }
 0x28a   : > { %1688 = vmatprep.subr.bf16.mxu1 %v1730_v2 }
 0x28d   : > { %1689 = vmatpush3.bf16.msra.mxu1 %v1720_v21 }
 0x33c   : > { %v950_v22 = vpop.f32.mrf.mxu1 }
 0x33d   : > { %v956_v23 = vadd.f32 %v950_v22, %v895_v3 }
 0x33e   : > { %v1647_v24 = vpop.f32.mrf.mxu1 }
 0x33f   : > { %957 = vst.msk [vmem:[#allocation2] sm:$0x3] %vm396_vm5, %v956_v23 }
 0x340   : > { %v953_v25 = vpop.f32.mrf.mxu1  ;;  %v1090_v26 = vpop.f32.mrf.mxu0 }
 0x342   : > { %v1648_v27 = vpop.f32.mrf.mxu1  ;;  %v1662_v28 = vpop.f32.mrf.mxu0 }
 0x344   : > { %v1169_v29 = vpop.f32.mrf.mxu1  ;;  %v1093_v30 = vpop.f32.mrf.mxu0 }
 0x345   : > { %v1170_v31 = vadd.f32 %v1829_v10, %v1169_v29 }
 0x346   : > { %v1035_v32 = vld [vmem:[#allocation2] sm:$0x3]  ;;  %v1670_v33 = vpop.f32.mrf.mxu1  ;;  %v1663_v34 = vpop.f32.mrf.mxu0 }
 0x347   : > { %v1173_v2 = vmax.f32 %v1170_v31, 0.0  ;;  %v1096_v35 = vadd.f32 %v1090_v26, %v1035_v32 }
 0x348   : > { %v1309_v36 = vpop.f32.mrf.mxu1 }
 0x349   : > { %v1174_v37 = vpack.c.bf16 %v1173_v2, %v1173_v2  ;;  %1097 = vst.msk [vmem:[#allocation2] sm:$0x3] %vm396_vm5, %v1096_v35  ;;  %v1310_v38 = vadd.f32 %v1829_v10, %v1309_v36 }
 0x34a   : > { %v1685_v39 = vpop.f32.mrf.mxu1 }
 0x34b   : > { %v1313_v40 = vmax.f32 %v1310_v38, 0.0  ;;  %1676 = vmatmul.mubr.msk.bf16.vlgmr.msra.gmra.mxu0 %vm351_vm4, %v1174_v37 }
 0x34d   : > { %v1314_v41 = vpack.c.bf16 %v1313_v40, %v1313_v40 }
 0x34f   : > { %1691 = vmatmul.mubr.msk.bf16.vlgmr.msra.gmra.mxu1 %vm351_vm4, %v1314_v41 }
 0x350   : > { %v1175_v42 = vld [vmem:[#allocation2] sm:$0x3] }
 0x40b   : > { %v1230_v43 = vpop.f32.mrf.mxu0 }
 0x40c   : > { %v1236_v44 = vadd.f32 %v1230_v43, %v1175_v42 }
 0x40d   : > { %v1677_v45 = vpop.f32.mrf.mxu0 }
 0x40e   : > { %1237 = vst.msk [vmem:[#allocation2] sm:$0x3] %vm396_vm5, %v1236_v44 }
 0x40f   : > { %v1233_v46 = vpop.f32.mrf.mxu0  ;;  %v1370_v47 = vpop.f32.mrf.mxu1 }
 0x411   : > { %v1678_v48 = vpop.f32.mrf.mxu0  ;;  %v1692_v49 = vpop.f32.mrf.mxu1 }
 0x413   : > { %v1373_v50 = vpop.f32.mrf.mxu1 }
 0x414   : > { %1381 = sbr.rel (%p1521_p5) target bundleno = 1063 (0x427), region = 48 }
 0x415   : > { %v1315_v51 = vld [vmem:[#allocation2] sm:$0x3]  ;;  %v1693_v10 = vpop.f32.mrf.mxu1 }
 0x416   : > { %v1376_v52 = vadd.f32 %v1370_v47, %v1315_v51 }
 0x418   : > { %1377 = vst.msk [vmem:[#allocation2] sm:$0x3] %vm396_vm5, %v1376_v52 }
 0x419   : > { %v1522_v54 = vld [vmem:[%s1957_s4] ss:$0 sm:$0xff]  ;;  %vm1393_vm6 = vcmask 253952  }
 0x41f   : > { %v1382_v53 = vld [vmem:[#allocation2] sm:$0x3] }
 0x420   : > { %v1390_v55 = vadd.f32 %v1522_v54, %v1382_v53 }
 0x422   : > { %v1391_v56 = vmax.f32 %v1390_v55, 0.0 }
 0x424   : > { %v1392_v57 = vpack.c.bf16 %v1391_v56, %v1391_v56 }
 0x426   : > { %1394 = vst.msk [vmem:[%s1958_s5] sm:$0x1] %vm1393_vm6, %v1392_v57 }
 0x427 PF: > { %s15_s18 = sadd.s32 1, %s1727_s18  }
 0x428   : > { %p12_p6 = scmp.ge.s32.totalorder %s15_s18, 7  }
 0x42a   :  { %14 = sbr.rel (!%p12_p6) target bundleno = 1 (0x1), region = 91 }

</bundles_post_ra>
